<compile_context>
chip_gen: v7x
topology: tpu7x:2x2x1
jax: 0.10.0
libtpu: 0.0.40
codegen_flags: <defaults>
</compile_context>

<pallas_src>
import jax
import jax.numpy as jnp
from jax.experimental import pallas as pl
from jax.experimental.pallas import tpu as pltpu


# --------------------------------------------------------------------------- #
# Kernels
# --------------------------------------------------------------------------- #
def _convblock_reduce_kernel(d_ref, q_ref, beta_ref, o_ref, acc_ref):
    """One (tm, tn) output tile, accumulated over the K grid axis (P3)."""
    k = pl.program_id(2)

    @pl.when(k == 0)
    def _():
        acc_ref[...] = jnp.zeros_like(acc_ref)

    acc_ref[...] += jnp.dot(
        d_ref[...], q_ref[...], preferred_element_type=jnp.float32
    )

    @pl.when(k == pl.num_programs(2) - 1)
    def _():
        # Fused bias add + cast epilogue (single elementwise pass -> one store).
        o_ref[...] = (acc_ref[...] + beta_ref[...].astype(jnp.float32)).astype(
            o_ref.dtype
        )


def _convblock_fast_kernel(d_ref, q_ref, beta_ref, o_ref):
    """One (tm, tn) output tile, whole-K dot: no accumulator, no predication."""
    o_ref[...] = (
        jnp.dot(d_ref[...], q_ref[...], preferred_element_type=jnp.float32)
        + beta_ref[...].astype(jnp.float32)
    ).astype(o_ref.dtype)


# --------------------------------------------------------------------------- #
# Helpers
# --------------------------------------------------------------------------- #
def _round_up(x, m):
    return ((x + m - 1) // m) * m


def _vmem_capacity_bytes():
    try:
        return int(pltpu.get_tpu_info().vmem_capacity_bytes)
    except Exception:
        return 64 * 1024 * 1024  # conservative (v7x-sized) fallback


def _maybe_pad(x, rows, cols):
    r, c = x.shape
    if r == rows and c == cols:
        return x
    return jnp.pad(x, ((0, rows - r), (0, cols - c)))


# --------------------------------------------------------------------------- #
# Wrapper
# --------------------------------------------------------------------------- #
def convolution_block(Q, D_l, Beta_l, *, tm=512, tn=512, tk=None,
                      compute_dtype=None, allow_fast_path=True):
    """C_l = D_l @ Q + Beta_l  (matches ConvolutionBlock.forward).

    compute_dtype: optionally cast D_l/Q to (e.g.) jnp.bfloat16 for full MXU
    throughput; accumulation and the bias epilogue stay in f32 either way.
    (bf16 truncation of the inputs loosens numerics vs the f32 PyTorch module.)
    """
    M, K = D_l.shape
    K2, N = Q.shape
    assert K == K2, "inner dims must match"
    assert Beta_l.shape == (M, N)

    # Result dtype follows the *original* operand dtypes (PyTorch promotion).
    out_dtype = jnp.result_type(D_l.dtype, Q.dtype, Beta_l.dtype)

    if compute_dtype is not None:
        D_l = D_l.astype(compute_dtype)
        Q = Q.astype(compute_dtype)

    in_item = jnp.dtype(D_l.dtype).itemsize
    beta_item = jnp.dtype(Beta_l.dtype).itemsize
    out_item = jnp.dtype(out_dtype).itemsize

    # Sublane packing multiple for sub-32-bit dtypes (bf16 vreg is [16,128]).
    packing = max(1, 4 // in_item)        # f32 -> 1, bf16 -> 2, int8/fp8 -> 4
    align_m = 8 * packing                 # second-minor of D / output
    align_n = 128                         # minor of Q / Beta / output
    align_k = 128                         # minor of D (lane axis), >= Q sublane mult

    if tk is None:
        tk = 1024 * packing               # fatter K tiles for packed dtypes

    vmem_cap = _vmem_capacity_bytes()

    # ---- tile sizes (zero-padding handles awkward shapes; no full-dim fallback)
    tm = min(_round_up(tm, align_m), _round_up(M, align_m))
    tn = min(_round_up(tn, align_n), _round_up(N, align_n))
    tk = min(_round_up(tk, align_k), _round_up(K, align_k))

    # Keep >= 2 parallel grid points so both v7x TensorCores get work.
    Mp = _round_up(M, tm)
    Np = _round_up(N, tn)
    if (Mp // tm) * (Np // tn) < 2:
        if _round_up(M, align_m) >= 2 * align_m:
            tm = _round_up(-(-Mp // 2), align_m)
        elif _round_up(N, align_n) >= 2 * align_n:
            tn = _round_up(-(-Np // 2), align_n)
    Mp = _round_up(M, tm)
    Np = _round_up(N, tn)

    # ---- fast path decision: whole K as one block if it fits comfortably.
    Kp_min = _round_up(K, align_k)
    fast_in_bytes = 2 * Kp_min * (tm + tn) * in_item          # D/Q, double-buffered
    fast_io_bytes = 2 * tm * tn * (beta_item + out_item)      # Beta + output
    fast_budget = min(int(0.4 * vmem_cap), 28 * 1024 * 1024)
    use_fast = allow_fast_path and (fast_in_bytes + fast_io_bytes) <= fast_budget

    if use_fast:
        tk = Kp_min
        Kp = Kp_min
        grid = (Mp // tm, Np // tn)
    else:
        tk = min(tk, Kp_min)
        Kp = _round_up(K, tk)
        grid = (Mp // tm, Np // tn, Kp // tk)

    grid_m, grid_n = Mp // tm, Np // tn

    # ---- zero-pad operands (exact for D@Q; padded output region sliced off).
    D_p = _maybe_pad(D_l, Mp, Kp)
    Q_p = _maybe_pad(Q, Kp, Np)
    B_p = _maybe_pad(Beta_l, Mp, Np)

    # ---- VMEM budget derived from the tiles actually chosen (generation-aware).
    tile_bytes = (
        2 * (tm * tk + tk * tn) * in_item      # D / Q tiles, double-buffered
        + 2 * tm * tn * beta_item              # Beta tile
        + 2 * tm * tn * out_item               # output tile
        + (0 if use_fast else tm * tn * 4)     # f32 accumulator scratch
    )
    vmem_limit = min(max(int(1.5 * tile_bytes), 32 * 1024 * 1024),
                     int(0.8 * vmem_cap))
    vmem_limit = max(vmem_limit, tile_bytes + (1 << 20))  # never below what we use

    # ---- cost estimate reflecting real HBM re-streaming (D x grid_n, Q x grid_m).
    cost = pl.CostEstimate(
        flops=2 * Mp * Np * Kp,
        bytes_accessed=(
            Mp * Kp * in_item * grid_n
            + Kp * Np * in_item * grid_m
            + Mp * Np * beta_item
            + Mp * Np * out_item
        ),
        transcendentals=0,
    )

    if use_fast:
        kernel = _convblock_fast_kernel
        in_specs = [
            pl.BlockSpec((tm, Kp), lambda i, j: (i, 0)),   # D_l row-strip
            pl.BlockSpec((Kp, tn), lambda i, j: (0, j)),   # Q col-strip
            pl.BlockSpec((tm, tn), lambda i, j: (i, j)),   # Beta_l tile
        ]
        out_specs = pl.BlockSpec((tm, tn), lambda i, j: (i, j))
        scratch_shapes = ()
        dim_sem = ("parallel", "parallel")
    else:
        kernel = _convblock_reduce_kernel
        in_specs = [
            pl.BlockSpec((tm, tk), lambda i, j, k: (i, k)),   # D_l tile
            pl.BlockSpec((tk, tn), lambda i, j, k: (k, j)),   # Q tile
            pl.BlockSpec((tm, tn), lambda i, j, k: (i, j)),   # Beta_l tile
        ]
        out_specs = pl.BlockSpec((tm, tn), lambda i, j, k: (i, j))
        scratch_shapes = (pltpu.VMEM((tm, tn), jnp.float32),)
        dim_sem = ("parallel", "parallel", "arbitrary")

    out_p = pl.pallas_call(
        kernel,
        out_shape=jax.ShapeDtypeStruct((Mp, Np), out_dtype),
        grid_spec=pltpu.PrefetchScalarGridSpec(
            num_scalar_prefetch=0,
            grid=grid,
            in_specs=in_specs,
            out_specs=out_specs,
            scratch_shapes=scratch_shapes,
        ),
        compiler_params=pltpu.CompilerParams(
            dimension_semantics=dim_sem,
            vmem_limit_bytes=vmem_limit,
        ),
        cost_estimate=cost,
    )(D_p, Q_p, B_p)

    if (Mp, Np) != (M, N):
        out_p = out_p[:M, :N]
    return out_p


# --------------------------------------------------------------------------- #
# Self-test
# --------------------------------------------------------------------------- #
if __name__ == "__main__":
    key = jax.random.PRNGKey(0)

    # Case 1: aligned shapes, modest K -> no-reduction fast path.
    M, K, N = 256, 512, 256
    k1, k2, k3 = jax.random.split(key, 3)
    D_l = jax.random.normal(k1, (M, K), dtype=jnp.float32)
    Qm = jax.random.normal(k2, (K, N), dtype=jnp.float32)
    Beta_l = jax.random.normal(k3, (M, N), dtype=jnp.float32)

    C1 = convolution_block(Qm, D_l, Beta_l)
    jax.block_until_ready(C1)
    ref1 = D_l @ Qm + Beta_l
    assert C1.shape == (M, N)
    assert jnp.allclose(C1, ref1, atol=1e-3, rtol=1e-3), "fast path mismatch"

    # Case 2: awkward (non-multiple) shapes, forced K-reduction grid path
    # (exercises zero-padding, f32 accumulator, and the megacore tm split).
    M2, Kb, N2 = 200, 1000, 300
    k4, k5, k6 = jax.random.split(jax.random.PRNGKey(1), 3)
    D2 = jax.random.normal(k4, (M2, Kb), dtype=jnp.float32)
    Q2 = jax.random.normal(k5, (Kb, N2), dtype=jnp.float32)
    B2 = jax.random.normal(k6, (M2, N2), dtype=jnp.float32)

    C2 = convolution_block(Q2, D2, B2, tk=256, allow_fast_path=False)
    jax.block_until_ready(C2)
    ref2 = D2 @ Q2 + B2
    assert C2.shape == (M2, N2)
    assert jnp.allclose(C2, ref2, atol=1e-3, rtol=1e-3), "reduction path mismatch"

    # Case 3: bf16-compute production path (f32 accumulation, fused f32 bias).
    C3 = convolution_block(Qm, D_l, Beta_l, compute_dtype=jnp.bfloat16)
    jax.block_until_ready(C3)
    ref3 = (D_l.astype(jnp.bfloat16).astype(jnp.float32)
            @ Qm.astype(jnp.bfloat16).astype(jnp.float32)) + Beta_l
    assert C3.shape == (M, N)
    assert jnp.allclose(C3, ref3, atol=2e-2, rtol=2e-2), "bf16 path mismatch"

    print("KERNEL_OK")
</pallas_src>

<mosaic_0001>
module attributes {stable_mosaic.version = 11 : i64} {
  func.func @_convblock_fast_kernel(%arg0: i32, %arg1: i32, %arg2: memref<128x512xf32, #tpu.memory_space<vmem>>, %arg3: memref<512x256xf32, #tpu.memory_space<vmem>>, %arg4: memref<128x256xf32, #tpu.memory_space<vmem>>, %arg5: memref<128x256xf32, #tpu.memory_space<vmem>>) attributes {dimension_semantics = [#tpu.dimension_semantics<parallel>, #tpu.dimension_semantics<parallel>], iteration_bounds = array<i64: 2, 1>, scalar_prefetch = 0 : i64, scratch_operands = 0 : i64, tpu.core_type = #tpu.core_type<tc>, window_params = [{transform_indices = @transform_0, window_bounds = array<i64: 128, 512>}, {transform_indices = @transform_1, window_bounds = array<i64: 512, 256>}, {transform_indices = @transform_2, window_bounds = array<i64: 128, 256>}, {transform_indices = @transform_3, window_bounds = array<i64: 128, 256>}]} {
    %c0 = arith.constant 0 : index
    %c0_0 = arith.constant 0 : index
    %0 = vector.load %arg2[%c0, %c0_0] : memref<128x512xf32, #tpu.memory_space<vmem>>, vector<128x512xf32>
    %c0_1 = arith.constant 0 : index
    %c0_2 = arith.constant 0 : index
    %1 = vector.load %arg3[%c0_1, %c0_2] : memref<512x256xf32, #tpu.memory_space<vmem>>, vector<512x256xf32>
    %cst = arith.constant dense<0.000000e+00> : vector<128x256xf32>
    %2 = tpu.matmul %0, %1, %cst {dimension_numbers = #tpu.dot_dimension_numbers<[1], [0], [0], [1], [0, 0, 1, 1], [], []>} : vector<128x512xf32>, vector<512x256xf32>, vector<128x256xf32> -> vector<128x256xf32>
    %c0_3 = arith.constant 0 : index
    %c0_4 = arith.constant 0 : index
    %3 = vector.load %arg4[%c0_3, %c0_4] : memref<128x256xf32, #tpu.memory_space<vmem>>, vector<128x256xf32>
    %4 = arith.addf %2, %3 : vector<128x256xf32>
    %c0_5 = arith.constant 0 : index
    %c0_6 = arith.constant 0 : index
    %5 = vector.load %arg5[%c0_5, %c0_6] : memref<128x256xf32, #tpu.memory_space<vmem>>, vector<128x256xf32>
    tpu.vector_store %arg5[%c0_5, %c0_6], %4 {strides = array<i32>} : memref<128x256xf32, #tpu.memory_space<vmem>>, vector<128x256xf32>,
    return
  }
  func.func @transform_0(%arg0: i32, %arg1: i32) -> (i32, i32) {
    %c0_i32 = arith.constant 0 : i32
    %c0_i32_0 = arith.constant 0 : i32
    return %arg0, %c0_i32 : i32, i32
  }
  func.func @transform_1(%arg0: i32, %arg1: i32) -> (i32, i32) {
    %c0_i32 = arith.constant 0 : i32
    %c0_i32_0 = arith.constant 0 : i32
    return %c0_i32, %arg1 : i32, i32
  }
  func.func @transform_2(%arg0: i32, %arg1: i32) -> (i32, i32) {
    %c0_i32 = arith.constant 0 : i32
    return %arg0, %arg1 : i32, i32
  }
  func.func @transform_3(%arg0: i32, %arg1: i32) -> (i32, i32) {
    %c0_i32 = arith.constant 0 : i32
    return %arg0, %arg1 : i32, i32
  }
}

</mosaic_0001>

<bundles_post_ra>
// kernel: tpu_custom_call.1
= control target key start
LH: loop header
LB: loop body
LE: loop exit
PB: predicated region body
PF: predicated region fallthrough
CT: control target
= control target key end

     0   :  { %s1905_s0 = inlined_call_operand.hbm [shape: f32[256,512], index: 0, kind: input, shape index: {}]   ;;  %s1906_s1 = inlined_call_operand.hbm [shape: f32[512,256], index: 1, kind: input, shape index: {}]   ;;  %s1907_s2 = inlined_call_operand.hbm [shape: f32[256,256], index: 2, kind: input, shape index: {}]   ;;  %s1908_s3 = inlined_call_operand.hbm [shape: f32[256,256], index: 3, kind: output, shape index: {}]  }
   0x1   :  { %1913 = sst [smem:[#allocation13_spill]] %s1905_s0 }
   0x2   :  { %1914 = sst [smem:[#allocation14_spill]] %s1907_s2 }
   0x3   :  { %8 = vsyncpa [#allocation3], 0 }
   0x4   :  { %10 = vsyncpa [#allocation3 + $0x1], 0 }
   0x5   :  { %11 = vsyncpa [#allocation6], 0 }
   0x6   :  { %12 = vsyncpa [#allocation4], 0 }
   0x7   :  { %14 = vsyncpa [#allocation4 + $0x1], 0  ;;  %s1505_s12 = smov 0   ;;  %s1507_s13 = smov 0  }
   0x8   :  { %s1509_s14 = smov 0   ;;  %s1511_s15 = smov 0  }
   0x9   :  { %s1513_s16 = smov 0   ;;  %s1515_s17 = smov 0  }
   0xa LB: > { %s32_s18 = sadd.s32 1, %s1469_s16  ;;  %s39_s19 = sadd.s32 1, %s1461_s14  ;;  %s1473_s17 = sphi %s1515_s17, %s20_s17   ;;  %s1469_s16 = sphi %s1513_s16, %s1934_s16   ;;  %s1465_s15 = sphi %s1511_s15, %s1933_s15   ;;  %s1461_s14 = sphi %s1509_s14, %s1932_s14   ;;  %s1457_s13 = sphi %s1507_s13, %s1931_s13   ;;  %s1453_s12 = sphi %s1505_s12, %s1930_s12  }
   0xb   : > { %p34_p0 = scmp.ge.s32.totalorder %s32_s18, 2  ;;  %p46_p1 = scmp.ne.s32.totalorder %s1461_s14, %s1457_s13 }
   0xc   : > { %p47_p2 = scmp.eq.s32.totalorder %s1473_s17, 0  ;;  %p1237_p5 = scmp.lt.s32.totalorder %s1473_s17, 2 }
   0xd   : > { %s1936_s18 = smov (%p34_p0, %s32_s18), 0  ;;  %s174_s21 = sand.u32 1, %s1473_s17  }
   0xe   : > { %p48_p4 = por %p47_p2, %p46_p1  ;;  %s36_s20 = ssub.s32 %s1469_s16, %s1936_s18 }
   0xf   : > { %p37_p6 = scmp.eq.s32.totalorder %s36_s20, 0  ;;  %s176_s22 = sand.u32 1, %s1461_s14  }
  0x10   : > { %s1014_s23 = sshll.u32 %s1469_s16, 13  ;;  %s994_s25 = sshll.u32 %s176_s22, 9 }
  0x11   : > { %s1553_s24 = scalar_select %p37_p6, %s1461_s14, %s39_s19  }
  0x12   : > { %s1915_s0 = sld [smem:[#allocation13_spill]]  ;;  %p1560_p7 = pnand %p1237_p5, %p48_p4 }
  0x13   : > { %s178_s30 = scalar_lea.vmem [#allocation2], %s994_s25  ;;  %s1566_s5 = sshll.u32 %s176_s22, 8 }
  0x14   : > { %s186_s4 = sshll.u32 %s178_s30, 4  ;;  %s1568_s6 = scalar_lea.sflag [#allocation3], %s174_s21  ;;  %s1564_s4 = int_to_ptr.vmem [resolvable:$true] %s186_s4 }
  0x15   : > { %p1297_p9 = pneg %p1560_p7 }
  0x18   : > { %s1558_s28 = scalar_lea.hbm %s1915_s0, %s1014_s23  ;;  %s1300_s10 = scalar_lea.hbm %s1915_s0, 16384 }
  0x19   : > { %s1295_s7 = scalar_lea.hbm %s1558_s28, 8192  ;;  %p1301_p12 = scmp.lt.u32.totalorder %s1558_s28, %s1915_s0 }
  0x1a   : > { %p1296_p8 = scmp.ne.s32.totalorder %s1558_s28, %s1295_s7  ;;  %p1302_p13 = scmp.lt.u32.totalorder %s1300_s10, %s1295_s7 }
  0x1b   : > { %p1304_p2 = scmp.lt.u32.totalorder %s1295_s7, %s1558_s28 }
  0x1c   : > { %p1298_p10 = pnand %p1297_p9, %p1296_p8  ;;  %p1303_p0 = por %p1302_p13, %p1301_p12 }
  0x1e   : > { %p1299_p11 = pneg %p1298_p10  ;;  %p1305_p4 = por %p1304_p2, %p1303_p0 }
  0x20   : > { %p1306_p5 = pnand %p1305_p4, %p1299_p11 }
  0x22   : > { %1309 = shalt.err (!%p1306_p5)
}
  0x23   : > { %s1310_s20 = scalar_lea.vmem %s1564_s4, 8192  ;;  %s1475_s21 = smov [#allocation2]  }
  0x24   : > { %p1311_p6 = scmp.ne.s32.totalorder %s1564_s4, %s1310_s20  ;;  %s1315_s22 = sshll.u32 %s1475_s21, 4  ;;  %s1316_s22 = int_to_ptr.vmem [resolvable:$false] %s1315_s22 }
  0x25   : > { %s1317_s23 = scalar_lea.vmem %s1316_s22, 16384  ;;  %p1318_p3 = scmp.lt.s32.totalorder %s1564_s4, %s1316_s22 }
  0x26   : > { %p1313_p8 = pnand %p1311_p6, %p1297_p9  ;;  %p1319_p12 = scmp.lt.s32.totalorder %s1317_s23, %s1310_s20 }
  0x28   : > { %p1314_p10 = pneg %p1313_p8  ;;  %p1320_p13 = por %p1319_p12, %p1318_p3 }
  0x2a   : > { %p1321_p0 = pnand %p1320_p13, %p1314_p10 }
  0x2c   : > { %1324 = shalt.err (!%p1321_p0)
}
  0x2d   : > { %s1476_s25 = smov 512   ;;  %s1477_s26 = smov 32  }
  0x2e   : > { %1228 = dma.hbm_to_vmem [thread:$0]  (!%p1560_p7), %s1558_s28, 8192, %s1564_s4, %s1568_s6, %s1476_s25, %s1476_s25, %s1477_s26  }
  0x2f   : > { %s1597_s27 = sadd.s32 4294967295, %s1473_s17   ;;  %s990_s30 = sadd.s32 4294967294, %s1473_s17  }
  0x30   : > { %p52_p3 = scmp.ne.s32.totalorder %s1457_s13, %s1453_s12  ;;  %p1909_p11 = scmp.eq.s32.totalorder %s1597_s27, 0 }
  0x31   : > { %p132_p2 = scmp.eq.s32.totalorder %s1597_s27, 1  ;;  %p138_p4 = scmp.eq.s32.totalorder %s990_s30, 1 }
  0x32   : > { %p1606_p5 = por %p1909_p11, %p52_p3  ;;  %p991_p6 = scmp.ge.s32.totalorder %s1473_s17, 1 }
  0x33   : > { %p1614_p8 = por %p132_p2, %p46_p1  ;;  %p1618_p10 = por %p138_p4, %p52_p3 }
  0x34   : > { %s1917_s7 = scalar_select %p1606_p5, 1, 0 }
  0x35   : > { %s1918_s28 = scalar_select %p1614_p8, 1, 0 }
  0x36   : > { %s1919_s4 = scalar_select %p1618_p10, 1, 0 }
  0x37   : > { %p145_p12 = scmp.lt.s32.totalorder %s1473_s17, 3  ;;  %s200_s8 = scalar_lea.vmem [#allocation7], %s1566_s5 }
  0x38   : > { %s210_s9 = sshll.u32 %s200_s8, 4  ;;  %s1478_s11 = smov [#allocation5]   ;;  %s1636_s9 = int_to_ptr.vmem [resolvable:$true] %s210_s9 }
  0x39   : > { %p1624_p13 = pnand %p991_p6, %p145_p12  ;;  %s160_s19 = sshll.u32 %s1478_s11, 4  ;;  %s1638_s19 = int_to_ptr.vmem [resolvable:$true] %s160_s19 }
  0x3a   : > { %s1016_s20 = sshll.u32 %s1469_s16, 12  ;;  %s1921_s2 = sld [smem:[#allocation14_spill]] }
  0x3b   : > { %s1920_s10 = scalar_select %p1624_p13, 1, 0 }
  0x3c   : > { %p1221_p1 = pneg %p1624_p13 }
  0x3e   : > { %p1642_p0 = pnand %p1221_p1, %p1909_p11 }
  0x40   : > { %s1634_s23 = scalar_lea.hbm %s1921_s2, %s1016_s20  ;;  %s1330_s8 = scalar_lea.hbm %s1921_s2, 8192 }
  0x41   : > { %s1325_s25 = scalar_lea.hbm %s1634_s23, 4096  ;;  %p1331_p6 = scmp.lt.u32.totalorder %s1634_s23, %s1921_s2 }
  0x42   : > { %p1326_p3 = scmp.ne.s32.totalorder %s1634_s23, %s1325_s25  ;;  %p1332_p12 = scmp.lt.u32.totalorder %s1330_s8, %s1325_s25 }
  0x43   : > { %p1334_p1 = scmp.lt.u32.totalorder %s1325_s25, %s1634_s23 }
  0x44   : > { %p1328_p2 = pnand %p1326_p3, %p1297_p9  ;;  %p1333_p10 = por %p1332_p12, %p1331_p6 }
  0x46   : > { %p1329_p4 = pneg %p1328_p2  ;;  %p1335_p11 = por %p1334_p1, %p1333_p10 }
  0x48   : > { %p1336_p8 = pnand %p1335_p11, %p1329_p4 }
  0x4a   : > { %1339 = shalt.err (!%p1336_p8)
}
  0x4b   : > { %s1340_s21 = scalar_lea.vmem %s1636_s9, 4096  ;;  %s1479_s22 = smov [#allocation7]  }
  0x4c   : > { %p1341_p3 = scmp.ne.s32.totalorder %s1636_s9, %s1340_s21  ;;  %s1345_s26 = sshll.u32 %s1479_s22, 4  ;;  %s1346_s26 = int_to_ptr.vmem [resolvable:$false] %s1345_s26 }
  0x4d   : > { %s1347_s30 = scalar_lea.vmem %s1346_s26, 8192  ;;  %p1348_p13 = scmp.lt.s32.totalorder %s1636_s9, %s1346_s26 }
  0x4e   : > { %p1343_p2 = pnand %p1341_p3, %p1297_p9  ;;  %p1349_p6 = scmp.lt.s32.totalorder %s1347_s30, %s1340_s21 }
  0x50   : > { %p1344_p5 = pneg %p1343_p2  ;;  %p1350_p12 = por %p1349_p6, %p1348_p13 }
  0x52   : > { %p1351_p10 = pnand %p1350_p12, %p1344_p5 }
  0x54   : > { %1354 = shalt.err (!%p1351_p10)
}
  0x55   : > { %s1480_s25 = smov 256   ;;  %s1481_s8 = smov 16  }
  0x56   : > { %1231 = dma.hbm_to_vmem [thread:$0]  (!%p1560_p7), %s1634_s23, 4096, %s1636_s9, %s1568_s6, %s1480_s25, %s1480_s25, %s1481_s8  }
  0x57   : > { %s1355_s22 = scalar_lea.hbm %s1906_s1, 16384  ;;  %p1357_p11 = pneg %p1642_p0 }
  0x58   : > { %p1356_p9 = scmp.ne.s32.totalorder %s1906_s1, %s1355_s22  ;;  %p1362_p13 = scmp.lt.u32.totalorder %s1355_s22, %s1906_s1 }
  0x5a   : > { %p1358_p5 = pnand %p1357_p11, %p1356_p9 }
  0x5c   : > { %p1359_p8 = pneg %p1358_p5 }
  0x5e   : > { %p1364_p4 = pnand %p1362_p13, %p1359_p8 }
  0x60   : > { %1367 = shalt.err (!%p1364_p4)
}
  0x61   : > { %s1368_s29 = scalar_lea.vmem %s1638_s19, 16384  ;;  %p1376_p2 = scmp.lt.s32.totalorder %s1638_s19, %s1638_s19 }
  0x62   : > { %p1369_p7 = scmp.ne.s32.totalorder %s1638_s19, %s1368_s29  ;;  %p1377_p6 = scmp.lt.s32.totalorder %s1368_s29, %s1368_s29 }
  0x64   : > { %p1371_p1 = pnand %p1369_p7, %p1357_p11  ;;  %p1378_p12 = por %p1377_p6, %p1376_p2 }
  0x66   : > { %p1372_p3 = pneg %p1371_p1 }
  0x68   : > { %p1379_p10 = pnand %p1378_p12, %p1372_p3 }
  0x6a   : > { %1382 = shalt.err (!%p1379_p10)
}
  0x6b   : > { %1224 = dma.hbm_to_vmem [thread:$0]  (!%p1642_p0), %s1906_s1, 16384, %s1638_s19, [#allocation6], %s1480_s25, %s1480_s25, %s1481_s8  }
  0x6c   : > { %p1923_p9 = scmp.ne.s32.totalorder %s1920_s10, 0 }
  0x6d   : > { %s224_s6 = sand.u32 (!%p1923_p9), 1, %s1597_s27   ;;  %s1695_s9 = sand.u32 (!%p1923_p9), 1, %s1457_s13  }
  0x6e   : > { %222 = sbr.rel (%p1923_p9) target bundleno = 483 (0x1e3), region = 32  ;;  %s1003_s23 = sshll.u32 (!%p1923_p9), %s1695_s9, 9 }
  0x6f   : > { %s225_s30 = scalar_lea.sflag (!%p1923_p9), [#allocation3], %s224_s6  ;;  %s1698_s11 = scalar_lea.vmem (!%p1923_p9), [#allocation2], %s1003_s23 }
  0x70   : > { %p1924_p11 = scmp.ne.s32.totalorder (!%p1923_p9), %s1917_s7, 0 }
  0x75   : > { %1436 = dma.done.wait (%p1924_p11), %s225_s30, 8192  }
  0x76   : > { %1438 = vsyncadd (%p1924_p11), %s225_s30, 4294959104  ;;  %p1925_p0 = scmp.eq.s32.totalorder %s1597_s27, 0 }
  0x78   : > { %1440 = dma.done.wait (%p1925_p0), [#allocation6], 16384   ;;  %p1926_p5 = pmov %p1925_p0 }
  0x79   : > { %s1005_s10 = sshll.u32 %s1695_s9, 8 }
  0x7a   : > { %1442 = vsyncadd (%p1926_p5), [#allocation6], 4294950912  ;;  %s1711_s19 = scalar_lea.vmem [#allocation7], %s1005_s10 }
  0x7b   : > { %1444 = dma.done.wait (%p1924_p11), %s225_s30, 4096  }
  0x7c   : > { %1446 = vsyncadd (%p1924_p11), %s225_s30, 4294963200  ;;  %v340_v0 = vld [vmem:[#allocation5 + $0x8] sm:$0xff]  ;;  %v342_v1 = vld [vmem:[#allocation5 + $0x18] sm:$0xff]  ;;  %s1787_s27 = scalar_lea.vmem [#allocation8], %s1005_s10  ;;  %s1018_s7 = sshll.u32 %s1465_s15, 12 }
  0x7d   : > { %v339_v2 = vld [vmem:[#allocation5] sm:$0xff]  ;;  %v1019_v3 = vpack.c.bf16 %v342_v1, %v340_v0  ;;  %v341_v4 = vld [vmem:[#allocation5 + $0x10] sm:$0xff]  ;;  %v404_v5 = vld [vmem:[#allocation5 + $0x208] sm:$0xff]  ;;  %s870_s5 = sshll.u32 %s1787_s27, 4  ;;  %s1852_s20 = scalar_lea.hbm %s1908_s3, %s1018_s7  ;;  %s1854_s5 = int_to_ptr.vmem [resolvable:$true] %s870_s5 }
  0x7e   : > { %v406_v6 = vld [vmem:[#allocation5 + $0x218] sm:$0xff]  ;;  %v1021_v7 = vpack.c.bf16 %v341_v4, %v339_v2  ;;  %v403_v9 = vld [vmem:[#allocation5 + $0x200] sm:$0xff]  ;;  %v405_v10 = vld [vmem:[#allocation5 + $0x210] sm:$0xff]  ;;  %s854_s15 = scalar_lea.sflag [#allocation4], %s1695_s9  ;;  %s1383_s22 = scalar_lea.vmem %s1854_s5, 4096 }
  0x7f   : > { %v1083_v8 = vpack.c.bf16 %v406_v6, %v404_v5  ;;  %v344_v11 = vld [vmem:[#allocation5 + $0x28] sm:$0xff]  ;;  %1020 = vmatprep.subr.bf16.mxu1 %v1019_v3  ;;  %v1085_v12 = vpack.c.bf16 %v405_v10, %v403_v9  ;;  %v346_v13 = vld [vmem:[#allocation5 + $0x38] sm:$0xff]  ;;  %v343_v14 = vld [vmem:[#allocation5 + $0x20] sm:$0xff]  ;;  %p1384_p8 = scmp.ne.s32.totalorder %s1854_s5, %s1383_s22  ;;  %p1927_p13 = scmp.ne.s32.totalorder %s1918_s28, 0 }
  0x80   : > { %v345_v15 = vld [vmem:[#allocation5 + $0x30] sm:$0xff]  ;;  %1022 = vmatpush1.bf16.msra.mxu1 %v1021_v7  ;;  %v1023_v16 = vpack.c.bf16 %v346_v13, %v344_v11  ;;  %v408_v18 = vld [vmem:[#allocation5 + $0x228] sm:$0xff]  ;;  %v410_v19 = vld [vmem:[#allocation5 + $0x238] sm:$0xff]  ;;  %s1482_s21 = smov [#allocation8]  }
  0x81   : > { %1084 = vmatprep.subr.bf16.mxu0 %v1083_v8  ;;  %v1025_v17 = vpack.c.bf16 %v345_v15, %v343_v14  ;;  %v407_v20 = vld [vmem:[#allocation5 + $0x220] sm:$0xff]  ;;  %v1087_v21 = vpack.c.bf16 %v410_v19, %v408_v18  ;;  %v409_v22 = vld [vmem:[#allocation5 + $0x230] sm:$0xff]  ;;  %v348_v23 = vld [vmem:[#allocation5 + $0x48] sm:$0xff]  ;;  %p1385_p4 = pnand %p1384_p8, %p1927_p13  ;;  %s1387_s26 = sshll.u32 %s1482_s21, 4  ;;  %s1388_s26 = int_to_ptr.vmem [resolvable:$false] %s1387_s26 }
  0x82   : > { %1086 = vmatpush1.bf16.msra.mxu0 %v1085_v12  ;;  %v350_v24 = vld [vmem:[#allocation5 + $0x58] sm:$0xff]  ;;  %1024 = vmatprep.subr.bf16.mxu1 %v1023_v16  ;;  %v1089_v25 = vpack.c.bf16 %v409_v22, %v407_v20  ;;  %v347_v27 = vld [vmem:[#allocation5 + $0x40] sm:$0xff]  ;;  %v349_v28 = vld [vmem:[#allocation5 + $0x50] sm:$0xff]  ;;  %s1389_s29 = scalar_lea.vmem %s1388_s26, 8192  ;;  %p1390_p1 = scmp.lt.s32.totalorder %s1854_s5, %s1388_s26 }
  0x83   : > { %v1027_v26 = vpack.c.bf16 %v350_v24, %v348_v23  ;;  %v412_v29 = vld [vmem:[#allocation5 + $0x248] sm:$0xff]  ;;  %1088 = vmatprep.subr.bf16.mxu0 %v1087_v21  ;;  %v414_v30 = vld [vmem:[#allocation5 + $0x258] sm:$0xff]  ;;  %v411_v31 = vld [vmem:[#allocation5 + $0x240] sm:$0xff]  ;;  %v1029_v33 = vpack.c.bf16 %v349_v28, %v347_v27  ;;  %p1386_p7 = pneg %p1385_p4  ;;  %p1391_p3 = scmp.lt.s32.totalorder %s1389_s29, %s1383_s22 }
  0x84   : > { %v413_v32 = vld [vmem:[#allocation5 + $0x250] sm:$0xff]  ;;  %1026 = vmatpush1.bf16.msra.mxu1 %v1025_v17  ;;  %v1091_v34 = vpack.c.bf16 %v414_v30, %v412_v29  ;;  %v352_v35 = vld [vmem:[#allocation5 + $0x68] sm:$0xff]  ;;  %v354_v36 = vld [vmem:[#allocation5 + $0x78] sm:$0xff] }
  0x85   : > { %v351_v37 = vld [vmem:[#allocation5 + $0x60] sm:$0xff]  ;;  %1028 = vmatprep.subr.bf16.mxu1 %v1027_v26  ;;  %v1093_v38 = vpack.c.bf16 %v413_v32, %v411_v31  ;;  %v1031_v39 = vpack.c.bf16 %v354_v36, %v352_v35  ;;  %v353_v40 = vld [vmem:[#allocation5 + $0x70] sm:$0xff]  ;;  %v416_v41 = vld [vmem:[#allocation5 + $0x268] sm:$0xff]  ;;  %p1392_p2 = por %p1391_p3, %p1390_p1 }
  0x86   : > { %1090 = vmatpush1.bf16.msra.mxu0 %v1089_v25  ;;  %v418_v42 = vld [vmem:[#allocation5 + $0x278] sm:$0xff]  ;;  %v415_v44 = vld [vmem:[#allocation5 + $0x260] sm:$0xff]  ;;  %v417_v45 = vld [vmem:[#allocation5 + $0x270] sm:$0xff]  ;;  %v1033_v48 = vpack.c.bf16 %v353_v40, %v351_v37 }
  0x87   : > { %1092 = vmatprep.subr.bf16.mxu0 %v1091_v34  ;;  %v1095_v43 = vpack.c.bf16 %v418_v42, %v416_v41  ;;  %v356_v46 = vld [vmem:[#allocation5 + $0x88] sm:$0xff]  ;;  %v358_v47 = vld [vmem:[#allocation5 + $0x98] sm:$0xff]  ;;  %v1097_v51 = vpack.c.bf16 %v417_v45, %v415_v44  ;;  %v355_v53 = vld [vmem:[#allocation5 + $0x80] sm:$0xff]  ;;  %p1393_p6 = pnand %p1392_p2, %p1386_p7 }
  0x88   : > { %1030 = vmatpush1.bf16.msra.mxu1 %v1029_v33  ;;  %v420_v49 = vld [vmem:[#allocation5 + $0x288] sm:$0xff]  ;;  %v422_v50 = vld [vmem:[#allocation5 + $0x298] sm:$0xff]  ;;  %v1035_v52 = vpack.c.bf16 %v358_v47, %v356_v46  ;;  %v357_v54 = vld [vmem:[#allocation5 + $0x90] sm:$0xff] }
  0x89   : > { %1032 = vmatprep.subr.bf16.mxu1 %v1031_v39  ;;  %v419_v55 = vld [vmem:[#allocation5 + $0x280] sm:$0xff]  ;;  %v1099_v56 = vpack.c.bf16 %v422_v50, %v420_v49  ;;  %v421_v57 = vld [vmem:[#allocation5 + $0x290] sm:$0xff]  ;;  %v360_v58 = vld [vmem:[#allocation5 + $0xa8] sm:$0xff]  ;;  %v1037_v62 = vpack.c.bf16 %v357_v54, %v355_v53 }
  0x8a   : > { %1094 = vmatpush1.bf16.msra.mxu0 %v1093_v38  ;;  %v362_v59 = vld [vmem:[#allocation5 + $0xb8] sm:$0xff]  ;;  %v424_v60 = vld [vmem:[#allocation5 + $0x2a8] sm:$0xff]  ;;  %v1101_v63 = vpack.c.bf16 %v421_v57, %v419_v55  ;;  %v359_v1 = vld [vmem:[#allocation5 + $0xa0] sm:$0xff] }
  0x8b   : > { %1096 = vmatprep.subr.bf16.mxu0 %v1095_v43  ;;  %v426_v61 = vld [vmem:[#allocation5 + $0x2b8] sm:$0xff]  ;;  %v1039_v0 = vpack.c.bf16 %v362_v59, %v360_v58  ;;  %v361_v2 = vld [vmem:[#allocation5 + $0xb0] sm:$0xff]  ;;  %v423_v3 = vld [vmem:[#allocation5 + $0x2a0] sm:$0xff] }
  0x8c   : > { %1034 = vmatpush1.bf16.msra.mxu1 %v1033_v48  ;;  %v1103_v4 = vpack.c.bf16 %v426_v61, %v424_v60  ;;  %v425_v5 = vld [vmem:[#allocation5 + $0x2b0] sm:$0xff]  ;;  %v364_v6 = vld [vmem:[#allocation5 + $0xc8] sm:$0xff]  ;;  %v366_v7 = vld [vmem:[#allocation5 + $0xd8] sm:$0xff]  ;;  %v1041_v10 = vpack.c.bf16 %v361_v2, %v359_v1 }
  0x8d   : > { %1036 = vmatprep.subr.bf16.mxu1 %v1035_v52  ;;  %v428_v8 = vld [vmem:[#allocation5 + $0x2c8] sm:$0xff]  ;;  %v430_v9 = vld [vmem:[#allocation5 + $0x2d8] sm:$0xff]  ;;  %v1105_v11 = vpack.c.bf16 %v425_v5, %v423_v3  ;;  %v1043_v12 = vpack.c.bf16 %v366_v7, %v364_v6  ;;  %v363_v13 = vld [vmem:[#allocation5 + $0xc0] sm:$0xff] }
  0x8e   : > { %1098 = vmatpush1.bf16.msra.mxu0 %v1097_v51  ;;  %v365_v14 = vld [vmem:[#allocation5 + $0xd0] sm:$0xff]  ;;  %v427_v15 = vld [vmem:[#allocation5 + $0x2c0] sm:$0xff]  ;;  %v1107_v16 = vpack.c.bf16 %v430_v9, %v428_v8  ;;  %v368_v18 = vld [vmem:[#allocation5 + $0xe8] sm:$0xff] }
  0x8f   : > { %1100 = vmatprep.subr.bf16.mxu0 %v1099_v56  ;;  %v429_v17 = vld [vmem:[#allocation5 + $0x2d0] sm:$0xff]  ;;  %v370_v19 = vld [vmem:[#allocation5 + $0xf8] sm:$0xff]  ;;  %v432_v20 = vld [vmem:[#allocation5 + $0x2e8] sm:$0xff]  ;;  %v1045_v22 = vpack.c.bf16 %v365_v14, %v363_v13 }
  0x90   : > { %1038 = vmatpush1.bf16.msra.mxu1 %v1037_v62  ;;  %v434_v21 = vld [vmem:[#allocation5 + $0x2f8] sm:$0xff]  ;;  %v1109_v23 = vpack.c.bf16 %v429_v17, %v427_v15  ;;  %v1047_v24 = vpack.c.bf16 %v370_v19, %v368_v18  ;;  %v367_v25 = vld [vmem:[#allocation5 + $0xe0] sm:$0xff]  ;;  %v369_v26 = vld [vmem:[#allocation5 + $0xf0] sm:$0xff] }
  0x91   : > { %1040 = vmatprep.subr.bf16.mxu1 %v1039_v0  ;;  %v431_v27 = vld [vmem:[#allocation5 + $0x2e0] sm:$0xff]  ;;  %v1111_v28 = vpack.c.bf16 %v434_v21, %v432_v20  ;;  %v433_v29 = vld [vmem:[#allocation5 + $0x2f0] sm:$0xff]  ;;  %v372_v30 = vld [vmem:[#allocation5 + $0x108] sm:$0xff]  ;;  %v1049_v34 = vpack.c.bf16 %v369_v26, %v367_v25 }
  0x92   : > { %1102 = vmatpush1.bf16.msra.mxu0 %v1101_v63  ;;  %v374_v31 = vld [vmem:[#allocation5 + $0x118] sm:$0xff]  ;;  %v436_v32 = vld [vmem:[#allocation5 + $0x308] sm:$0xff]  ;;  %v1113_v35 = vpack.c.bf16 %v433_v29, %v431_v27  ;;  %v371_v37 = vld [vmem:[#allocation5 + $0x100] sm:$0xff] }
  0x93   : > { %1104 = vmatprep.subr.bf16.mxu0 %v1103_v4  ;;  %v438_v33 = vld [vmem:[#allocation5 + $0x318] sm:$0xff]  ;;  %v1051_v36 = vpack.c.bf16 %v374_v31, %v372_v30  ;;  %v373_v38 = vld [vmem:[#allocation5 + $0x110] sm:$0xff]  ;;  %v435_v39 = vld [vmem:[#allocation5 + $0x300] sm:$0xff] }
  0x94   : > { %1042 = vmatpush1.bf16.msra.mxu1 %v1041_v10  ;;  %v1115_v40 = vpack.c.bf16 %v438_v33, %v436_v32  ;;  %v437_v41 = vld [vmem:[#allocation5 + $0x310] sm:$0xff]  ;;  %v376_v42 = vld [vmem:[#allocation5 + $0x128] sm:$0xff]  ;;  %v378_v43 = vld [vmem:[#allocation5 + $0x138] sm:$0xff]  ;;  %v1053_v46 = vpack.c.bf16 %v373_v38, %v371_v37 }
  0x95   : > { %1044 = vmatprep.subr.bf16.mxu1 %v1043_v12  ;;  %v440_v44 = vld [vmem:[#allocation5 + $0x328] sm:$0xff]  ;;  %v442_v45 = vld [vmem:[#allocation5 + $0x338] sm:$0xff]  ;;  %v1117_v47 = vpack.c.bf16 %v437_v41, %v435_v39  ;;  %v1055_v48 = vpack.c.bf16 %v378_v43, %v376_v42  ;;  %v375_v49 = vld [vmem:[#allocation5 + $0x120] sm:$0xff] }
  0x96   : > { %1106 = vmatpush1.bf16.msra.mxu0 %v1105_v11  ;;  %v377_v50 = vld [vmem:[#allocation5 + $0x130] sm:$0xff]  ;;  %v439_v51 = vld [vmem:[#allocation5 + $0x320] sm:$0xff]  ;;  %v1119_v52 = vpack.c.bf16 %v442_v45, %v440_v44  ;;  %v380_v54 = vld [vmem:[#allocation5 + $0x148] sm:$0xff] }
  0x97   : > { %1108 = vmatprep.subr.bf16.mxu0 %v1107_v16  ;;  %v441_v53 = vld [vmem:[#allocation5 + $0x330] sm:$0xff]  ;;  %v382_v55 = vld [vmem:[#allocation5 + $0x158] sm:$0xff]  ;;  %v444_v56 = vld [vmem:[#allocation5 + $0x348] sm:$0xff]  ;;  %v1057_v58 = vpack.c.bf16 %v377_v50, %v375_v49 }
  0x98   : > { %1046 = vmatpush1.bf16.msra.mxu1 %v1045_v22  ;;  %v446_v57 = vld [vmem:[#allocation5 + $0x358] sm:$0xff]  ;;  %v1121_v59 = vpack.c.bf16 %v441_v53, %v439_v51  ;;  %v1059_v60 = vpack.c.bf16 %v382_v55, %v380_v54  ;;  %v379_v61 = vld [vmem:[#allocation5 + $0x140] sm:$0xff]  ;;  %v381_v62 = vld [vmem:[#allocation5 + $0x150] sm:$0xff] }
  0x99   : > { %1048 = vmatprep.subr.bf16.mxu1 %v1047_v24  ;;  %v443_v63 = vld [vmem:[#allocation5 + $0x340] sm:$0xff]  ;;  %v1123_v0 = vpack.c.bf16 %v446_v57, %v444_v56  ;;  %v445_v1 = vld [vmem:[#allocation5 + $0x350] sm:$0xff]  ;;  %v384_v2 = vld [vmem:[#allocation5 + $0x168] sm:$0xff]  ;;  %v1061_v6 = vpack.c.bf16 %v381_v62, %v379_v61 }
  0x9a   : > { %1110 = vmatpush1.bf16.msra.mxu0 %v1109_v23  ;;  %v386_v3 = vld [vmem:[#allocation5 + $0x178] sm:$0xff]  ;;  %v448_v4 = vld [vmem:[#allocation5 + $0x368] sm:$0xff]  ;;  %v383_v7 = vld [vmem:[#allocation5 + $0x160] sm:$0xff]  ;;  %v1125_v8 = vpack.c.bf16 %v445_v1, %v443_v63 }
  0x9b   : > { %1112 = vmatprep.subr.bf16.mxu0 %v1111_v28  ;;  %v450_v5 = vld [vmem:[#allocation5 + $0x378] sm:$0xff]  ;;  %v1063_v9 = vpack.c.bf16 %v386_v3, %v384_v2  ;;  %v385_v10 = vld [vmem:[#allocation5 + $0x170] sm:$0xff]  ;;  %v447_v11 = vld [vmem:[#allocation5 + $0x360] sm:$0xff] }
  0x9c   : > { %1050 = vmatpush1.bf16.msra.mxu1 %v1049_v34  ;;  %v449_v12 = vld [vmem:[#allocation5 + $0x370] sm:$0xff]  ;;  %v1127_v13 = vpack.c.bf16 %v450_v5, %v448_v4  ;;  %v388_v14 = vld [vmem:[#allocation5 + $0x188] sm:$0xff]  ;;  %v390_v15 = vld [vmem:[#allocation5 + $0x198] sm:$0xff]  ;;  %v1065_v20 = vpack.c.bf16 %v385_v10, %v383_v7 }
  0x9d   : > { %1052 = vmatprep.subr.bf16.mxu1 %v1051_v36  ;;  %v276_v16 = vld [vmem:[%s1698_s11 + $0x8] sm:$0xff]  ;;  %v454_v18 = vld [vmem:[#allocation5 + $0x398] sm:$0xff]  ;;  %v1129_v21 = vpack.c.bf16 %v449_v12, %v447_v11  ;;  %v1067_v22 = vpack.c.bf16 %v390_v15, %v388_v14  ;;  %v387_v23 = vld [vmem:[#allocation5 + $0x180] sm:$0xff] }
  0x9e   : > { %1114 = vmatpush1.bf16.msra.mxu0 %v1113_v35  ;;  %v452_v17 = vld [vmem:[#allocation5 + $0x388] sm:$0xff]  ;;  %563 = vmatprep.mubr.f32.mxu1 %v276_v16  ;;  %v278_v19 = vld [vmem:[%s1698_s11 + $0x18] sm:$0xff]  ;;  %v389_v24 = vld [vmem:[#allocation5 + $0x190] sm:$0xff] }
  0x9f   : > { %1116 = vmatprep.subr.bf16.mxu0 %v1115_v40  ;;  %724 = vmatprep.mubr.f32.mxu0 %v278_v19  ;;  %v451_v25 = vld [vmem:[#allocation5 + $0x380] sm:$0xff]  ;;  %v1131_v26 = vpack.c.bf16 %v454_v18, %v452_v17  ;;  %v453_v27 = vld [vmem:[#allocation5 + $0x390] sm:$0xff]  ;;  %v392_v28 = vld [vmem:[#allocation5 + $0x1a8] sm:$0xff]  ;;  %v1069_v32 = vpack.c.bf16 %v389_v24, %v387_v23 }
  0xa0   : > { %1054 = vmatpush1.bf16.msra.mxu1 %v1053_v46  ;;  %v394_v29 = vld [vmem:[#allocation5 + $0x1b8] sm:$0xff]  ;;  %v456_v30 = vld [vmem:[#allocation5 + $0x3a8] sm:$0xff]  ;;  %v1133_v33 = vpack.c.bf16 %v453_v27, %v451_v25  ;;  %v391_v35 = vld [vmem:[#allocation5 + $0x1a0] sm:$0xff] }
  0xa1   : > { %1056 = vmatprep.subr.bf16.mxu1 %v1055_v48  ;;  %v458_v31 = vld [vmem:[#allocation5 + $0x3b8] sm:$0xff]  ;;  %v1071_v34 = vpack.c.bf16 %v394_v29, %v392_v28  ;;  %v393_v36 = vld [vmem:[#allocation5 + $0x1b0] sm:$0xff]  ;;  %v455_v37 = vld [vmem:[#allocation5 + $0x3a0] sm:$0xff] }
  0xa2   : > { %1118 = vmatpush1.bf16.msra.mxu0 %v1117_v47  ;;  %v1135_v38 = vpack.c.bf16 %v458_v31, %v456_v30  ;;  %v457_v39 = vld [vmem:[#allocation5 + $0x3b0] sm:$0xff]  ;;  %v396_v40 = vld [vmem:[#allocation5 + $0x1c8] sm:$0xff]  ;;  %v398_v41 = vld [vmem:[#allocation5 + $0x1d8] sm:$0xff]  ;;  %v1073_v44 = vpack.c.bf16 %v393_v36, %v391_v35 }
  0xa3   : > { %1120 = vmatprep.subr.bf16.mxu0 %v1119_v52  ;;  %v460_v42 = vld [vmem:[#allocation5 + $0x3c8] sm:$0xff]  ;;  %v462_v43 = vld [vmem:[#allocation5 + $0x3d8] sm:$0xff]  ;;  %v1137_v45 = vpack.c.bf16 %v457_v39, %v455_v37  ;;  %v1075_v46 = vpack.c.bf16 %v398_v41, %v396_v40  ;;  %v395_v47 = vld [vmem:[#allocation5 + $0x1c0] sm:$0xff] }
  0xa4   : > { %1058 = vmatpush1.bf16.msra.mxu1 %v1057_v58  ;;  %v397_v48 = vld [vmem:[#allocation5 + $0x1d0] sm:$0xff]  ;;  %v459_v49 = vld [vmem:[#allocation5 + $0x3c0] sm:$0xff]  ;;  %v1139_v50 = vpack.c.bf16 %v462_v43, %v460_v42  ;;  %v400_v52 = vld [vmem:[#allocation5 + $0x1e8] sm:$0xff] }
  0xa5   : > { %1060 = vmatprep.subr.bf16.mxu1 %v1059_v60  ;;  %v461_v51 = vld [vmem:[#allocation5 + $0x3d0] sm:$0xff]  ;;  %v402_v53 = vld [vmem:[#allocation5 + $0x1f8] sm:$0xff]  ;;  %v464_v54 = vld [vmem:[#allocation5 + $0x3e8] sm:$0xff]  ;;  %v1077_v56 = vpack.c.bf16 %v397_v48, %v395_v47 }
  0xa6   : > { %1122 = vmatpush1.bf16.msra.mxu0 %v1121_v59  ;;  %v466_v55 = vld [vmem:[#allocation5 + $0x3f8] sm:$0xff]  ;;  %v1141_v57 = vpack.c.bf16 %v461_v51, %v459_v49  ;;  %v1079_v58 = vpack.c.bf16 %v402_v53, %v400_v52  ;;  %v399_v59 = vld [vmem:[#allocation5 + $0x1e0] sm:$0xff]  ;;  %v401_v60 = vld [vmem:[#allocation5 + $0x1f0] sm:$0xff] }
  0xa7   : > { %1124 = vmatprep.subr.bf16.mxu0 %v1123_v0  ;;  %v1143_v61 = vpack.c.bf16 %v466_v55, %v464_v54  ;;  %v463_v62 = vld [vmem:[#allocation5 + $0x3e0] sm:$0xff]  ;;  %v465_v63 = vld [vmem:[#allocation5 + $0x3f0] sm:$0xff]  ;;  %v1081_v0 = vpack.c.bf16 %v401_v60, %v399_v59  ;;  %v280_v4 = vld [vmem:[%s1698_s11 + $0x28] sm:$0xff] }
  0xa8   : > { %1062 = vmatpush1.bf16.msra.mxu1 %v1061_v6  ;;  %v1145_v1 = vpack.c.bf16 %v465_v63, %v463_v62  ;;  %v275_v2 = vld [vmem:[%s1698_s11] sm:$0xff]  ;;  %v277_v3 = vld [vmem:[%s1698_s11 + $0x10] sm:$0xff]  ;;  %v282_v5 = vld [vmem:[%s1698_s11 + $0x38] sm:$0xff] }
  0xa9   : > { %1064 = vmatprep.subr.bf16.mxu1 %v1063_v9  ;;  %v279_v6 = vld [vmem:[%s1698_s11 + $0x20] sm:$0xff]  ;;  %v281_v7 = vld [vmem:[%s1698_s11 + $0x30] sm:$0xff]  ;;  %v286_v9 = vld [vmem:[%s1698_s11 + $0x58] sm:$0xff] }
  0xaa   : > { %1126 = vmatpush1.bf16.msra.mxu0 %v1125_v8  ;;  %v284_v8 = vld [vmem:[%s1698_s11 + $0x48] sm:$0xff]  ;;  %v283_v10 = vld [vmem:[%s1698_s11 + $0x40] sm:$0xff]  ;;  %v285_v11 = vld [vmem:[%s1698_s11 + $0x50] sm:$0xff] }
  0xab   : > { %1128 = vmatprep.subr.bf16.mxu0 %v1127_v13  ;;  %v288_v12 = vld [vmem:[%s1698_s11 + $0x68] sm:$0xff]  ;;  %v290_v13 = vld [vmem:[%s1698_s11 + $0x78] sm:$0xff]  ;;  %v287_v14 = vld [vmem:[%s1698_s11 + $0x60] sm:$0xff] }
  0xac   : > { %1066 = vmatpush1.bf16.msra.mxu1 %v1065_v20  ;;  %v289_v15 = vld [vmem:[%s1698_s11 + $0x70] sm:$0xff]  ;;  %v292_v16 = vld [vmem:[%s1698_s11 + $0x88] sm:$0xff]  ;;  %v294_v17 = vld [vmem:[%s1698_s11 + $0x98] sm:$0xff] }
  0xad   : > { %1068 = vmatprep.subr.bf16.mxu1 %v1067_v22  ;;  %v291_v18 = vld [vmem:[%s1698_s11 + $0x80] sm:$0xff]  ;;  %v293_v19 = vld [vmem:[%s1698_s11 + $0x90] sm:$0xff]  ;;  %v296_v20 = vld [vmem:[%s1698_s11 + $0xa8] sm:$0xff] }
  0xae   : > { %1130 = vmatpush1.bf16.msra.mxu0 %v1129_v21  ;;  %v298_v21 = vld [vmem:[%s1698_s11 + $0xb8] sm:$0xff]  ;;  %v295_v22 = vld [vmem:[%s1698_s11 + $0xa0] sm:$0xff]  ;;  %v297_v23 = vld [vmem:[%s1698_s11 + $0xb0] sm:$0xff] }
  0xaf   : > { %1132 = vmatprep.subr.bf16.mxu0 %v1131_v26  ;;  %v300_v24 = vld [vmem:[%s1698_s11 + $0xc8] sm:$0xff]  ;;  %v302_v25 = vld [vmem:[%s1698_s11 + $0xd8] sm:$0xff]  ;;  %v299_v26 = vld [vmem:[%s1698_s11 + $0xc0] sm:$0xff] }
  0xb0   : > { %1070 = vmatpush1.bf16.msra.mxu1 %v1069_v32  ;;  %v301_v27 = vld [vmem:[%s1698_s11 + $0xd0] sm:$0xff]  ;;  %v304_v28 = vld [vmem:[%s1698_s11 + $0xe8] sm:$0xff]  ;;  %v306_v29 = vld [vmem:[%s1698_s11 + $0xf8] sm:$0xff] }
  0xb1   : > { %1072 = vmatprep.subr.bf16.mxu1 %v1071_v34  ;;  %v303_v30 = vld [vmem:[%s1698_s11 + $0xe0] sm:$0xff]  ;;  %v305_v31 = vld [vmem:[%s1698_s11 + $0xf0] sm:$0xff]  ;;  %v308_v32 = vld [vmem:[%s1698_s11 + $0x108] sm:$0xff] }
  0xb2   : > { %1134 = vmatpush1.bf16.msra.mxu0 %v1133_v33  ;;  %v310_v33 = vld [vmem:[%s1698_s11 + $0x118] sm:$0xff]  ;;  %v307_v34 = vld [vmem:[%s1698_s11 + $0x100] sm:$0xff]  ;;  %v309_v35 = vld [vmem:[%s1698_s11 + $0x110] sm:$0xff] }
  0xb3   : > { %1136 = vmatprep.subr.bf16.mxu0 %v1135_v38  ;;  %v312_v36 = vld [vmem:[%s1698_s11 + $0x128] sm:$0xff]  ;;  %v314_v37 = vld [vmem:[%s1698_s11 + $0x138] sm:$0xff]  ;;  %v311_v38 = vld [vmem:[%s1698_s11 + $0x120] sm:$0xff] }
  0xb4   : > { %1074 = vmatpush1.bf16.msra.mxu1 %v1073_v44  ;;  %v313_v39 = vld [vmem:[%s1698_s11 + $0x130] sm:$0xff]  ;;  %v316_v40 = vld [vmem:[%s1698_s11 + $0x148] sm:$0xff]  ;;  %v318_v41 = vld [vmem:[%s1698_s11 + $0x158] sm:$0xff] }
  0xb5   : > { %1076 = vmatprep.subr.bf16.mxu1 %v1075_v46  ;;  %v315_v42 = vld [vmem:[%s1698_s11 + $0x140] sm:$0xff]  ;;  %v317_v43 = vld [vmem:[%s1698_s11 + $0x150] sm:$0xff]  ;;  %v320_v44 = vld [vmem:[%s1698_s11 + $0x168] sm:$0xff] }
  0xb6   : > { %1138 = vmatpush1.bf16.msra.mxu0 %v1137_v45  ;;  %v322_v45 = vld [vmem:[%s1698_s11 + $0x178] sm:$0xff]  ;;  %v319_v46 = vld [vmem:[%s1698_s11 + $0x160] sm:$0xff]  ;;  %v321_v47 = vld [vmem:[%s1698_s11 + $0x170] sm:$0xff] }
  0xb7   : > { %1140 = vmatprep.subr.bf16.mxu0 %v1139_v50  ;;  %v324_v48 = vld [vmem:[%s1698_s11 + $0x188] sm:$0xff]  ;;  %v326_v49 = vld [vmem:[%s1698_s11 + $0x198] sm:$0xff]  ;;  %v323_v50 = vld [vmem:[%s1698_s11 + $0x180] sm:$0xff] }
  0xb8   : > { %1078 = vmatpush1.bf16.msra.mxu1 %v1077_v56  ;;  %v325_v51 = vld [vmem:[%s1698_s11 + $0x190] sm:$0xff]  ;;  %v328_v52 = vld [vmem:[%s1698_s11 + $0x1a8] sm:$0xff]  ;;  %v330_v53 = vld [vmem:[%s1698_s11 + $0x1b8] sm:$0xff] }
  0xb9   : > { %1080 = vmatprep.subr.bf16.mxu1 %v1079_v58  ;;  %v327_v54 = vld [vmem:[%s1698_s11 + $0x1a0] sm:$0xff]  ;;  %v329_v55 = vld [vmem:[%s1698_s11 + $0x1b0] sm:$0xff]  ;;  %v332_v56 = vld [vmem:[%s1698_s11 + $0x1c8] sm:$0xff] }
  0xba   : > { %1142 = vmatpush1.bf16.msra.mxu0 %v1141_v57  ;;  %v334_v57 = vld [vmem:[%s1698_s11 + $0x1d8] sm:$0xff]  ;;  %v331_v58 = vld [vmem:[%s1698_s11 + $0x1c0] sm:$0xff]  ;;  %v333_v59 = vld [vmem:[%s1698_s11 + $0x1d0] sm:$0xff] }
  0xbb   : > { %1144 = vmatprep.subr.bf16.mxu0 %v1143_v61  ;;  %v336_v60 = vld [vmem:[%s1698_s11 + $0x1e8] sm:$0xff]  ;;  %v338_v61 = vld [vmem:[%s1698_s11 + $0x1f8] sm:$0xff]  ;;  %v335_v62 = vld [vmem:[%s1698_s11 + $0x1e0] sm:$0xff] }
  0xbc   : > { %1082 = vmatpush1.bf16.msra.mxu1 %v1081_v0  ;;  %v337_v63 = vld [vmem:[%s1698_s11 + $0x1f0] sm:$0xff]  ;;  %v467_v0 = vld [vmem:[%s1711_s19] sm:$0xff] }
  0xbe   : > { %1146 = vmatpush1.bf16.msra.mxu0 %v1145_v1  ;;  %v468_v1 = vld [vmem:[%s1711_s19 + $0x8] sm:$0xff] }
  0xbf   : > { %564 = vmatmul.mubr.f32.vlgmr.msra.gmra.mrb[0].mxu1 %v275_v2 }
  0xc0   : > { %569 = vmatprep.mubr.f32.mxu1 %v280_v4 }
  0xc1   : > { %725 = vmatmul.mubr.f32.vlgmr.msra.gmra.mrb[0].mxu0 %v277_v3 }
  0xc2   : > { %730 = vmatprep.mubr.f32.mxu0 %v282_v5 }
  0xc3   : > { %570 = vmatmul.mubr.f32.gmra.mrb[2].mxu1 %v279_v6 }
  0xc4   : > { %575 = vmatprep.mubr.f32.mxu1 %v284_v8  ;;  %v469_v8 = vld [vmem:[%s1711_s19 + $0x10] sm:$0xff] }
  0xc5   : > { %731 = vmatmul.mubr.f32.gmra.mrb[2].mxu0 %v281_v7 }
  0xc6   : > { %736 = vmatprep.mubr.f32.mxu0 %v286_v9 }
  0xc7   : > { %576 = vmatmul.mubr.f32.gmra.mrb[4].mxu1 %v283_v10  ;;  %v470_v10 = vld [vmem:[%s1711_s19 + $0x18] sm:$0xff] }
  0xc8   : > { %581 = vmatprep.mubr.f32.mxu1 %v288_v12 }
  0xc9   : > { %737 = vmatmul.mubr.f32.gmra.mrb[4].mxu0 %v285_v11 }
  0xca   : > { %742 = vmatprep.mubr.f32.mxu0 %v290_v13 }
  0xcb   : > { %582 = vmatmul.mubr.f32.gmra.mrb[6].mxu1 %v287_v14 }
  0xcc   : > { %587 = vmatprep.mubr.f32.mxu1 %v292_v16 }
  0xcd   : > { %743 = vmatmul.mubr.f32.gmra.mrb[6].mxu0 %v289_v15 }
  0xce   : > { %748 = vmatprep.mubr.f32.mxu0 %v294_v17 }
  0xcf   : > { %588 = vmatmul.mubr.f32.gmra.mrb[8].mxu1 %v291_v18  ;;  %v471_v18 = vld [vmem:[%s1711_s19 + $0x20] sm:$0xff] }
  0xd0   : > { %593 = vmatprep.mubr.f32.mxu1 %v296_v20  ;;  %v472_v20 = vld [vmem:[%s1711_s19 + $0x28] sm:$0xff] }
  0xd1   : > { %749 = vmatmul.mubr.f32.gmra.mrb[8].mxu0 %v293_v19 }
  0xd2   : > { %754 = vmatprep.mubr.f32.mxu0 %v298_v21 }
  0xd3   : > { %594 = vmatmul.mubr.f32.gmra.mrb[10].mxu1 %v295_v22 }
  0xd4   : > { %599 = vmatprep.mubr.f32.mxu1 %v300_v24 }
  0xd5   : > { %755 = vmatmul.mubr.f32.gmra.mrb[10].mxu0 %v297_v23 }
  0xd6   : > { %760 = vmatprep.mubr.f32.mxu0 %v302_v25 }
  0xd7   : > { %600 = vmatmul.mubr.f32.gmra.mrb[12].mxu1 %v299_v26 }
  0xd8   : > { %605 = vmatprep.mubr.f32.mxu1 %v304_v28  ;;  %v473_v28 = vld [vmem:[%s1711_s19 + $0x30] sm:$0xff] }
  0xd9   : > { %761 = vmatmul.mubr.f32.gmra.mrb[12].mxu0 %v301_v27 }
  0xda   : > { %766 = vmatprep.mubr.f32.mxu0 %v306_v29 }
  0xdb   : > { %606 = vmatmul.mubr.f32.gmra.mrb[14].mxu1 %v303_v30  ;;  %v474_v30 = vld [vmem:[%s1711_s19 + $0x38] sm:$0xff] }
  0xdc   : > { %611 = vmatprep.mubr.f32.mxu1 %v308_v32 }
  0xdd   : > { %767 = vmatmul.mubr.f32.gmra.mrb[14].mxu0 %v305_v31 }
  0xde   : > { %772 = vmatprep.mubr.f32.mxu0 %v310_v33 }
  0xdf   : > { %612 = vmatmul.mubr.f32.gmra.mrb[16].mxu1 %v307_v34 }
  0xe0   : > { %617 = vmatprep.mubr.f32.mxu1 %v312_v36 }
  0xe1   : > { %773 = vmatmul.mubr.f32.gmra.mrb[16].mxu0 %v309_v35 }
  0xe2   : > { %778 = vmatprep.mubr.f32.mxu0 %v314_v37 }
  0xe3   : > { %618 = vmatmul.mubr.f32.gmra.mrb[18].mxu1 %v311_v38  ;;  %v475_v38 = vld [vmem:[%s1711_s19 + $0x40] sm:$0xff] }
  0xe4   : > { %623 = vmatprep.mubr.f32.mxu1 %v316_v40  ;;  %v476_v40 = vld [vmem:[%s1711_s19 + $0x48] sm:$0xff] }
  0xe5   : > { %779 = vmatmul.mubr.f32.gmra.mrb[18].mxu0 %v313_v39 }
  0xe6   : > { %784 = vmatprep.mubr.f32.mxu0 %v318_v41 }
  0xe7   : > { %624 = vmatmul.mubr.f32.gmra.mrb[20].mxu1 %v315_v42 }
  0xe8   : > { %629 = vmatprep.mubr.f32.mxu1 %v320_v44 }
  0xe9   : > { %785 = vmatmul.mubr.f32.gmra.mrb[20].mxu0 %v317_v43 }
  0xea   : > { %790 = vmatprep.mubr.f32.mxu0 %v322_v45 }
  0xeb   : > { %630 = vmatmul.mubr.f32.gmra.mrb[22].mxu1 %v319_v46 }
  0xec   : > { %635 = vmatprep.mubr.f32.mxu1 %v324_v48  ;;  %v477_v48 = vld [vmem:[%s1711_s19 + $0x50] sm:$0xff] }
  0xed   : > { %791 = vmatmul.mubr.f32.gmra.mrb[22].mxu0 %v321_v47 }
  0xee   : > { %796 = vmatprep.mubr.f32.mxu0 %v326_v49 }
  0xef   : > { %636 = vmatmul.mubr.f32.gmra.mrb[24].mxu1 %v323_v50  ;;  %v478_v50 = vld [vmem:[%s1711_s19 + $0x58] sm:$0xff] }
  0xf0   : > { %641 = vmatprep.mubr.f32.mxu1 %v328_v52 }
  0xf1   : > { %797 = vmatmul.mubr.f32.gmra.mrb[24].mxu0 %v325_v51 }
  0xf2   : > { %802 = vmatprep.mubr.f32.mxu0 %v330_v53 }
  0xf3   : > { %642 = vmatmul.mubr.f32.gmra.mrb[26].mxu1 %v327_v54 }
  0xf4   : > { %647 = vmatprep.mubr.f32.mxu1 %v332_v56 }
  0xf5   : > { %803 = vmatmul.mubr.f32.gmra.mrb[26].mxu0 %v329_v55 }
  0xf6   : > { %808 = vmatprep.mubr.f32.mxu0 %v334_v57 }
  0xf7   : > { %648 = vmatmul.mubr.f32.gmra.mrb[28].mxu1 %v331_v58  ;;  %v479_v58 = vld [vmem:[%s1711_s19 + $0x60] sm:$0xff] }
  0xf8   : > { %653 = vmatprep.mubr.f32.mxu1 %v336_v60  ;;  %v480_v60 = vld [vmem:[%s1711_s19 + $0x68] sm:$0xff] }
  0xf9   : > { %809 = vmatmul.mubr.f32.gmra.mrb[28].mxu0 %v333_v59 }
  0xfa   : > { %814 = vmatprep.mubr.f32.mxu0 %v338_v61 }
  0xfb   : > { %654 = vmatmul.mubr.f32.gmra.mrb[30].mxu1 %v335_v62 }
  0xfd   : > { %815 = vmatmul.mubr.f32.gmra.mrb[30].mxu0 %v337_v63 }
 0x192   : > { %v565_v2 = vpop.f32.mrb[0].mxu1 }
 0x193   : > { %v566_v3 = vadd.f32 %v565_v2, %v467_v0  ;;  %v567_v4 = vpop.f32.mrb[1].mxu1 }
 0x194   : > { %v726_v5 = vpop.f32.mrb[0].mxu0  ;;  %v568_v6 = vadd.f32 %v567_v4, %v468_v1  ;;  %v481_v4 = vld [vmem:[%s1711_s19 + $0x70] sm:$0xff] }
 0x195   : > { %v728_v7 = vpop.f32.mrb[1].mxu0  ;;  %v727_v9 = vadd.f32 %v726_v5, %v566_v3 }
 0x196   : > { %v729_v11 = vadd.f32 %v728_v7, %v568_v6  ;;  %v571_v12 = vpop.f32.mrb[2].mxu1  ;;  %v482_v6 = vld [vmem:[%s1711_s19 + $0x78] sm:$0xff] }
 0x197   : > { %821 = vst [vmem:[%s1787_s27] sm:$0xff] %v727_v9  ;;  %v572_v13 = vadd.f32 %v571_v12, %v469_v8  ;;  %v573_v14 = vpop.f32.mrb[3].mxu1 }
 0x198   : > { %v732_v15 = vpop.f32.mrb[2].mxu0  ;;  %822 = vst [vmem:[%s1787_s27 + $0x8] sm:$0xff] %v729_v11  ;;  %v574_v16 = vadd.f32 %v573_v14, %v470_v10  ;;  %v483_v14 = vld [vmem:[%s1711_s19 + $0x80] sm:$0xff] }
 0x199   : > { %v734_v17 = vpop.f32.mrb[3].mxu0  ;;  %v733_v19 = vadd.f32 %v732_v15, %v572_v13 }
 0x19a   : > { %v735_v21 = vadd.f32 %v734_v17, %v574_v16  ;;  %v577_v22 = vpop.f32.mrb[4].mxu1  ;;  %v484_v16 = vld [vmem:[%s1711_s19 + $0x88] sm:$0xff] }
 0x19b   : > { %823 = vst [vmem:[%s1787_s27 + $0x10] sm:$0xff] %v733_v19  ;;  %v578_v23 = vadd.f32 %v577_v22, %v471_v18  ;;  %v579_v24 = vpop.f32.mrb[5].mxu1 }
 0x19c   : > { %v738_v25 = vpop.f32.mrb[4].mxu0  ;;  %824 = vst [vmem:[%s1787_s27 + $0x18] sm:$0xff] %v735_v21  ;;  %v580_v26 = vadd.f32 %v579_v24, %v472_v20  ;;  %v485_v24 = vld [vmem:[%s1711_s19 + $0x90] sm:$0xff] }
 0x19d   : > { %v740_v27 = vpop.f32.mrb[5].mxu0  ;;  %v739_v29 = vadd.f32 %v738_v25, %v578_v23 }
 0x19e   : > { %v741_v31 = vadd.f32 %v740_v27, %v580_v26  ;;  %v583_v32 = vpop.f32.mrb[6].mxu1  ;;  %v486_v26 = vld [vmem:[%s1711_s19 + $0x98] sm:$0xff] }
 0x19f   : > { %825 = vst [vmem:[%s1787_s27 + $0x20] sm:$0xff] %v739_v29  ;;  %v584_v33 = vadd.f32 %v583_v32, %v473_v28  ;;  %v585_v34 = vpop.f32.mrb[7].mxu1 }
 0x1a0   : > { %v744_v35 = vpop.f32.mrb[6].mxu0  ;;  %826 = vst [vmem:[%s1787_s27 + $0x28] sm:$0xff] %v741_v31  ;;  %v586_v36 = vadd.f32 %v585_v34, %v474_v30  ;;  %v487_v34 = vld [vmem:[%s1711_s19 + $0xa0] sm:$0xff] }
 0x1a1   : > { %v746_v37 = vpop.f32.mrb[7].mxu0  ;;  %v745_v39 = vadd.f32 %v744_v35, %v584_v33 }
 0x1a2   : > { %v747_v41 = vadd.f32 %v746_v37, %v586_v36  ;;  %v589_v42 = vpop.f32.mrb[8].mxu1  ;;  %v488_v36 = vld [vmem:[%s1711_s19 + $0xa8] sm:$0xff] }
 0x1a3   : > { %827 = vst [vmem:[%s1787_s27 + $0x30] sm:$0xff] %v745_v39  ;;  %v590_v43 = vadd.f32 %v589_v42, %v475_v38  ;;  %v591_v44 = vpop.f32.mrb[9].mxu1 }
 0x1a4   : > { %v750_v45 = vpop.f32.mrb[8].mxu0  ;;  %828 = vst [vmem:[%s1787_s27 + $0x38] sm:$0xff] %v747_v41  ;;  %v592_v46 = vadd.f32 %v591_v44, %v476_v40  ;;  %v489_v44 = vld [vmem:[%s1711_s19 + $0xb0] sm:$0xff] }
 0x1a5   : > { %v752_v47 = vpop.f32.mrb[9].mxu0  ;;  %v751_v49 = vadd.f32 %v750_v45, %v590_v43 }
 0x1a6   : > { %v753_v51 = vadd.f32 %v752_v47, %v592_v46  ;;  %v595_v52 = vpop.f32.mrb[10].mxu1  ;;  %v490_v46 = vld [vmem:[%s1711_s19 + $0xb8] sm:$0xff] }
 0x1a7   : > { %829 = vst [vmem:[%s1787_s27 + $0x40] sm:$0xff] %v751_v49  ;;  %v596_v53 = vadd.f32 %v595_v52, %v477_v48  ;;  %v597_v54 = vpop.f32.mrb[11].mxu1 }
 0x1a8   : > { %v756_v55 = vpop.f32.mrb[10].mxu0  ;;  %830 = vst [vmem:[%s1787_s27 + $0x48] sm:$0xff] %v753_v51  ;;  %v598_v56 = vadd.f32 %v597_v54, %v478_v50  ;;  %v491_v54 = vld [vmem:[%s1711_s19 + $0xc0] sm:$0xff] }
 0x1a9   : > { %v758_v57 = vpop.f32.mrb[11].mxu0  ;;  %v757_v59 = vadd.f32 %v756_v55, %v596_v53 }
 0x1aa   : > { %v759_v61 = vadd.f32 %v758_v57, %v598_v56  ;;  %v601_v62 = vpop.f32.mrb[12].mxu1  ;;  %v492_v56 = vld [vmem:[%s1711_s19 + $0xc8] sm:$0xff] }
 0x1ab   : > { %831 = vst [vmem:[%s1787_s27 + $0x50] sm:$0xff] %v757_v59  ;;  %v602_v63 = vadd.f32 %v601_v62, %v479_v58  ;;  %v603_v0 = vpop.f32.mrb[13].mxu1 }
 0x1ac   : > { %v762_v1 = vpop.f32.mrb[12].mxu0  ;;  %832 = vst [vmem:[%s1787_s27 + $0x58] sm:$0xff] %v759_v61  ;;  %v604_v2 = vadd.f32 %v603_v0, %v480_v60  ;;  %v493_v0 = vld [vmem:[%s1711_s19 + $0xd0] sm:$0xff] }
 0x1ad   : > { %v764_v3 = vpop.f32.mrb[13].mxu0  ;;  %v763_v5 = vadd.f32 %v762_v1, %v602_v63 }
 0x1ae   : > { %v765_v7 = vadd.f32 %v764_v3, %v604_v2  ;;  %v607_v8 = vpop.f32.mrb[14].mxu1  ;;  %v494_v2 = vld [vmem:[%s1711_s19 + $0xd8] sm:$0xff] }
 0x1af   : > { %833 = vst [vmem:[%s1787_s27 + $0x60] sm:$0xff] %v763_v5  ;;  %v608_v9 = vadd.f32 %v607_v8, %v481_v4  ;;  %v609_v10 = vpop.f32.mrb[15].mxu1 }
 0x1b0   : > { %v768_v11 = vpop.f32.mrb[14].mxu0  ;;  %834 = vst [vmem:[%s1787_s27 + $0x68] sm:$0xff] %v765_v7  ;;  %v610_v12 = vadd.f32 %v609_v10, %v482_v6  ;;  %v495_v10 = vld [vmem:[%s1711_s19 + $0xe0] sm:$0xff] }
 0x1b1   : > { %v770_v13 = vpop.f32.mrb[15].mxu0  ;;  %v769_v15 = vadd.f32 %v768_v11, %v608_v9 }
 0x1b2   : > { %v771_v17 = vadd.f32 %v770_v13, %v610_v12  ;;  %v613_v18 = vpop.f32.mrb[16].mxu1  ;;  %v496_v12 = vld [vmem:[%s1711_s19 + $0xe8] sm:$0xff] }
 0x1b3   : > { %835 = vst [vmem:[%s1787_s27 + $0x70] sm:$0xff] %v769_v15  ;;  %v614_v19 = vadd.f32 %v613_v18, %v483_v14  ;;  %v615_v20 = vpop.f32.mrb[17].mxu1 }
 0x1b4   : > { %v774_v21 = vpop.f32.mrb[16].mxu0  ;;  %836 = vst [vmem:[%s1787_s27 + $0x78] sm:$0xff] %v771_v17  ;;  %v616_v22 = vadd.f32 %v615_v20, %v484_v16  ;;  %v497_v20 = vld [vmem:[%s1711_s19 + $0xf0] sm:$0xff] }
 0x1b5   : > { %v776_v23 = vpop.f32.mrb[17].mxu0  ;;  %v775_v25 = vadd.f32 %v774_v21, %v614_v19 }
 0x1b6   : > { %v777_v27 = vadd.f32 %v776_v23, %v616_v22  ;;  %v619_v28 = vpop.f32.mrb[18].mxu1  ;;  %v498_v22 = vld [vmem:[%s1711_s19 + $0xf8] sm:$0xff] }
 0x1b7   : > { %837 = vst [vmem:[%s1787_s27 + $0x80] sm:$0xff] %v775_v25  ;;  %v620_v29 = vadd.f32 %v619_v28, %v485_v24  ;;  %v621_v30 = vpop.f32.mrb[19].mxu1 }
 0x1b8   : > { %v780_v31 = vpop.f32.mrb[18].mxu0  ;;  %838 = vst [vmem:[%s1787_s27 + $0x88] sm:$0xff] %v777_v27  ;;  %v622_v32 = vadd.f32 %v621_v30, %v486_v26 }
 0x1b9   : > { %v782_v33 = vpop.f32.mrb[19].mxu0  ;;  %v781_v35 = vadd.f32 %v780_v31, %v620_v29 }
 0x1ba   : > { %v783_v37 = vadd.f32 %v782_v33, %v622_v32  ;;  %v625_v38 = vpop.f32.mrb[20].mxu1 }
 0x1bb   : > { %839 = vst [vmem:[%s1787_s27 + $0x90] sm:$0xff] %v781_v35  ;;  %v626_v39 = vadd.f32 %v625_v38, %v487_v34  ;;  %v627_v40 = vpop.f32.mrb[21].mxu1 }
 0x1bc   : > { %v786_v41 = vpop.f32.mrb[20].mxu0  ;;  %840 = vst [vmem:[%s1787_s27 + $0x98] sm:$0xff] %v783_v37  ;;  %v628_v42 = vadd.f32 %v627_v40, %v488_v36 }
 0x1bd   : > { %v788_v43 = vpop.f32.mrb[21].mxu0  ;;  %v787_v45 = vadd.f32 %v786_v41, %v626_v39 }
 0x1be   : > { %v789_v47 = vadd.f32 %v788_v43, %v628_v42  ;;  %v631_v48 = vpop.f32.mrb[22].mxu1 }
 0x1bf   : > { %841 = vst [vmem:[%s1787_s27 + $0xa0] sm:$0xff] %v787_v45  ;;  %v632_v49 = vadd.f32 %v631_v48, %v489_v44  ;;  %v633_v50 = vpop.f32.mrb[23].mxu1 }
 0x1c0   : > { %v792_v51 = vpop.f32.mrb[22].mxu0  ;;  %842 = vst [vmem:[%s1787_s27 + $0xa8] sm:$0xff] %v789_v47  ;;  %v634_v52 = vadd.f32 %v633_v50, %v490_v46 }
 0x1c1   : > { %v794_v53 = vpop.f32.mrb[23].mxu0  ;;  %v793_v55 = vadd.f32 %v792_v51, %v632_v49 }
 0x1c2   : > { %v795_v57 = vadd.f32 %v794_v53, %v634_v52  ;;  %v637_v58 = vpop.f32.mrb[24].mxu1 }
 0x1c3   : > { %843 = vst [vmem:[%s1787_s27 + $0xb0] sm:$0xff] %v793_v55  ;;  %v638_v59 = vadd.f32 %v637_v58, %v491_v54  ;;  %v639_v60 = vpop.f32.mrb[25].mxu1 }
 0x1c4   : > { %v798_v61 = vpop.f32.mrb[24].mxu0  ;;  %844 = vst [vmem:[%s1787_s27 + $0xb8] sm:$0xff] %v795_v57  ;;  %v640_v62 = vadd.f32 %v639_v60, %v492_v56 }
 0x1c5   : > { %v800_v63 = vpop.f32.mrb[25].mxu0  ;;  %v799_v1 = vadd.f32 %v798_v61, %v638_v59 }
 0x1c6   : > { %v801_v3 = vadd.f32 %v800_v63, %v640_v62  ;;  %v643_v4 = vpop.f32.mrb[26].mxu1 }
 0x1c7   : > { %845 = vst [vmem:[%s1787_s27 + $0xc0] sm:$0xff] %v799_v1  ;;  %v644_v5 = vadd.f32 %v643_v4, %v493_v0  ;;  %v645_v6 = vpop.f32.mrb[27].mxu1 }
 0x1c8   : > { %v804_v7 = vpop.f32.mrb[26].mxu0  ;;  %846 = vst [vmem:[%s1787_s27 + $0xc8] sm:$0xff] %v801_v3  ;;  %v646_v8 = vadd.f32 %v645_v6, %v494_v2 }
 0x1c9   : > { %v806_v9 = vpop.f32.mrb[27].mxu0  ;;  %v805_v11 = vadd.f32 %v804_v7, %v644_v5 }
 0x1ca   : > { %v807_v13 = vadd.f32 %v806_v9, %v646_v8  ;;  %v649_v14 = vpop.f32.mrb[28].mxu1 }
 0x1cb   : > { %847 = vst [vmem:[%s1787_s27 + $0xd0] sm:$0xff] %v805_v11  ;;  %v650_v15 = vadd.f32 %v649_v14, %v495_v10  ;;  %v651_v16 = vpop.f32.mrb[29].mxu1 }
 0x1cc   : > { %v810_v17 = vpop.f32.mrb[28].mxu0  ;;  %848 = vst [vmem:[%s1787_s27 + $0xd8] sm:$0xff] %v807_v13  ;;  %v652_v18 = vadd.f32 %v651_v16, %v496_v12 }
 0x1cd   : > { %v812_v19 = vpop.f32.mrb[29].mxu0  ;;  %v811_v21 = vadd.f32 %v810_v17, %v650_v15 }
 0x1ce   : > { %v813_v23 = vadd.f32 %v812_v19, %v652_v18  ;;  %v655_v24 = vpop.f32.mrb[30].mxu1 }
 0x1cf   : > { %849 = vst [vmem:[%s1787_s27 + $0xe0] sm:$0xff] %v811_v21  ;;  %v656_v25 = vadd.f32 %v655_v24, %v497_v20  ;;  %v657_v26 = vpop.f32.mrb[31].mxu1 }
 0x1d0   : > { %v816_v27 = vpop.f32.mrb[30].mxu0  ;;  %850 = vst [vmem:[%s1787_s27 + $0xe8] sm:$0xff] %v813_v23  ;;  %v658_v28 = vadd.f32 %v657_v26, %v498_v22 }
 0x1d1   : > { %v818_v29 = vpop.f32.mrb[31].mxu0  ;;  %v817_v30 = vadd.f32 %v816_v27, %v656_v25 }
 0x1d2   : > { %v819_v31 = vadd.f32 %v818_v29, %v658_v28 }
 0x1d3   : > { %851 = vst [vmem:[%s1787_s27 + $0xf0] sm:$0xff] %v817_v30 }
 0x1d4   : > { %852 = vst [vmem:[%s1787_s27 + $0xf8] sm:$0xff] %v819_v31 }
 0x1d5   : > { %1396 = shalt.err (!%p1393_p6)
}
 0x1d6   : > { %s1397_s0 = scalar_lea.hbm %s1852_s20, 4096  ;;  %s1401_s23 = scalar_lea.hbm %s1908_s3, 8192 }
 0x1d7   : > { %p1398_p12 = scmp.ne.s32.totalorder %s1852_s20, %s1397_s0  ;;  %p1402_p11 = scmp.lt.u32.totalorder %s1852_s20, %s1908_s3 }
 0x1d8   : > { %p1403_p0 = scmp.lt.u32.totalorder %s1401_s23, %s1397_s0  ;;  %p1405_p8 = scmp.lt.u32.totalorder %s1397_s0, %s1852_s20 }
 0x1d9   : > { %p1399_p10 = pnand %p1398_p12, %p1927_p13 }
 0x1da   : > { %p1404_p5 = por %p1403_p0, %p1402_p11 }
 0x1db   : > { %p1400_p9 = pneg %p1399_p10 }
 0x1dc   : > { %p1406_p4 = por %p1405_p8, %p1404_p5 }
 0x1de   : > { %p1407_p7 = pnand %p1406_p4, %p1400_p9 }
 0x1e0   : > { %1410 = shalt.err (!%p1407_p7)
}
 0x1e1   : > { %s1483_s10 = smov 256   ;;  %s1484_s19 = smov 16  }
 0x1e2   : > { %1219 = dma.vmem_to_hbm [thread:$0]  (%p1927_p13), %s1854_s5, 4096, %s1852_s20, %s854_s15, %s1483_s10, %s1483_s10, %s1484_s19  }
 0x1e3 PF: > { %s885_s27 = sand.u32 1, %s1453_s12   ;;  %p1928_p1 = scmp.ne.s32.totalorder %s1919_s4, 0 }
 0x1e4   : > { %p1929_p3 = scmp.ge.s32.totalorder %s1473_s17, 2  ;;  %s886_s7 = scalar_lea.sflag [#allocation4], %s885_s27 }
 0x1e6   : > { %p1233_p2 = pnand %p1929_p3, %p1928_p1 }
 0x1e8   : > { %1448 = dma.done.wait (!%p1233_p2), %s886_s7, 4096  }
 0x1e9   : > { %1450 = vsyncadd (!%p1233_p2), %s886_s7, 4294963200  ;;  %s20_s17 = sadd.s32 1, %s1473_s17   ;;  %s1930_s12 = smov %s1457_s13 }
 0x1ea   : > { %p17_p6 = scmp.ge.s32.totalorder %s20_s17, 4   ;;  %s1931_s13 = smov %s1461_s14 }
 0x1eb   : > { %s1932_s14 = smov %s1553_s24  ;;  %s1933_s15 = smov %s1469_s16 }
 0x1ec   : > { %s1934_s16 = smov %s1936_s18  ;;  %19 = sbr.rel (!%p17_p6) target bundleno = 10 (0xa), region = 93 }
 0x1f3   :  { %891 = vsyncpa [#allocation3], 1 }
 0x1f4   :  { %893 = vsyncpa [#allocation3 + $0x1], 1 }
 0x1f5   :  { %894 = vsyncpa [#allocation6], 1 }
 0x1f6   :  { %895 = vsyncpa [#allocation4], 1 }
 0x1f7   :  { %897 = vsyncpa [#allocation4 + $0x1], 1 }

</bundles_post_ra>
